<compile_context>
chip_gen: v7x
topology: tpu7x:2x2x1
jax: 0.10.0
libtpu: 0.0.40
codegen_flags: <defaults>
</compile_context>

<pallas_src>
import functools

import jax
import jax.numpy as jnp
from jax.experimental import pallas as pl
from jax.experimental.pallas import tpu as pltpu

LANE = 128                      # TPU lane width
FUSED_SLAB_BYTES = 4 << 20      # use the fused path when C*L*4 bytes <= this
BLOCK_TARGET_BYTES = 2 << 20    # streaming path: ~2 MiB of HBM traffic per block
FUSED_VMEM_LIMIT = 48 << 20     # < 64 MiB physical on v7x, ample for ~7x slab
STREAM_VMEM_LIMIT = 32 << 20    # raise v5e's 16 MiB scoped default


def _round_up(n, m):
    return ((n + m - 1) // m) * m


# ----------------------------- fused single pass ----------------------------

def _fused_kernel(scale_ref, bias_ref, x_ref, o_ref, *, inv_n, eps):
    """Whole-sample slab resident in VMEM: stats + normalize in one pass."""
    x = x_ref[...].astype(jnp.float32)                        # (1, C, L)
    mean = jnp.sum(x) * inv_n
    var = jnp.maximum(jnp.sum(x * x) * inv_n - mean * mean, 0.0)
    rstd = jax.lax.rsqrt(var + eps)
    a = scale_ref[...].astype(jnp.float32) * rstd             # (1, C, 1)
    c = bias_ref[...].astype(jnp.float32) - mean * a          # (1, C, 1)
    o_ref[...] = (x * a + c).astype(o_ref.dtype)


# -------------------------- streaming two-pass path --------------------------

def _stats_kernel(scale_ref, bias_ref, x_ref, a_ref, c_ref, sums_ref,
                  *, L, tile, inv_n, eps):
    """Pass 1: per-sample sum / sum-of-squares -> folded affine (a, c)."""
    lt = pl.program_id(1)
    last = pl.num_programs(1) - 1

    @pl.when(lt == 0)
    def _init():
        sums_ref[0] = jnp.float32(0.0)
        sums_ref[1] = jnp.float32(0.0)

    x = x_ref[...].astype(jnp.float32)                        # (1, C, tile)

    def _accum(xv):
        sums_ref[0] = sums_ref[0] + jnp.sum(xv)
        sums_ref[1] = sums_ref[1] + jnp.sum(xv * xv)

    if L % tile == 0:
        # Every tile is fully valid; no mask work at all.
        _accum(x)
    else:
        # Only the last L tile has out-of-range lanes (OOB VMEM reads are
        # unchecked garbage -> they MUST be masked before accumulation).
        @pl.when(lt != last)
        def _full():
            _accum(x)

        @pl.when(lt == last)
        def _tail():
            idx = jax.lax.broadcasted_iota(jnp.int32, x.shape, 2)
            valid = idx < (L - lt * tile)
            _accum(jnp.where(valid, x, 0.0))

    @pl.when(lt == last)
    def _finalize():
        mean = sums_ref[0] * inv_n
        var = jnp.maximum(sums_ref[1] * inv_n - mean * mean, 0.0)
        rstd = jax.lax.rsqrt(var + eps)
        a = scale_ref[...].astype(jnp.float32) * rstd         # (1, C, 1)
        a_ref[...] = a
        c_ref[...] = bias_ref[...].astype(jnp.float32) - mean * a


def _apply_kernel(a_ref, c_ref, x_ref, o_ref):
    """Pass 2: one FMA per element; tail store masked automatically by Pallas."""
    o_ref[...] = (x_ref[...].astype(jnp.float32) * a_ref[...]
                  + c_ref[...]).astype(o_ref.dtype)


# --------------------------------- wrapper -----------------------------------

def global_norm(x, scale, bias, *, eps=1e-6, fused=None, tile_lanes=None):
    """Pallas GlobalNorm: x (B, C, L), scale/bias (1, C, 1)."""
    B, C, L = x.shape
    assert scale.shape == (1, C, 1) and bias.shape == (1, C, 1)
    inv_n = 1.0 / float(C * L)
    slab_f32 = C * L * 4

    if fused is None:
        fused = slab_f32 <= FUSED_SLAB_BYTES

    if fused:
        return pl.pallas_call(
            functools.partial(_fused_kernel, inv_n=inv_n, eps=float(eps)),
            out_shape=jax.ShapeDtypeStruct((B, C, L), x.dtype),
            grid=(B,),
            in_specs=[
                pl.BlockSpec((1, C, 1), lambda b: (0, 0, 0)),   # scale (resident)
                pl.BlockSpec((1, C, 1), lambda b: (0, 0, 0)),   # bias  (resident)
                pl.BlockSpec((1, C, L), lambda b: (b, 0, 0)),   # full sample slab
            ],
            out_specs=pl.BlockSpec((1, C, L), lambda b: (b, 0, 0)),
            compiler_params=pltpu.CompilerParams(
                dimension_semantics=("parallel",),
                vmem_limit_bytes=FUSED_VMEM_LIMIT),
        )(scale, bias, x)

    # ---- streaming two-pass fallback: tile L for ~BLOCK_TARGET_BYTES/block ----
    if tile_lanes is None:
        itemsize = jnp.dtype(x.dtype).itemsize
        tile_lanes = max(BLOCK_TARGET_BYTES // (C * itemsize), LANE)
    tile = max(LANE, min(_round_up(L, LANE), (int(tile_lanes) // LANE) * LANE))
    nt = pl.cdiv(L, tile)

    x_spec = pl.BlockSpec((1, C, tile), lambda b, l: (b, 0, l))
    ac_spec = pl.BlockSpec((1, C, 1), lambda b, l: (b, 0, 0))

    # Pass 1: per-sample folded affine (a, c); B is megacore-parallel.
    a_bc, c_bc = pl.pallas_call(
        functools.partial(_stats_kernel, L=L, tile=tile,
                          inv_n=inv_n, eps=float(eps)),
        out_shape=(jax.ShapeDtypeStruct((B, C, 1), jnp.float32),
                   jax.ShapeDtypeStruct((B, C, 1), jnp.float32)),
        grid=(B, nt),
        in_specs=[
            pl.BlockSpec((1, C, 1), lambda b, l: (0, 0, 0)),    # scale (resident)
            pl.BlockSpec((1, C, 1), lambda b, l: (0, 0, 0)),    # bias  (resident)
            x_spec,
        ],
        out_specs=(ac_spec, ac_spec),
        scratch_shapes=[pltpu.SMEM((2,), jnp.float32)],          # [sum, sumsq]
        compiler_params=pltpu.CompilerParams(
            dimension_semantics=("parallel", "arbitrary"),
            vmem_limit_bytes=STREAM_VMEM_LIMIT),
    )(scale, bias, x)

    # Pass 2: y = a*x + c on lane-dense tiles, fully parallel grid.
    return pl.pallas_call(
        _apply_kernel,
        out_shape=jax.ShapeDtypeStruct((B, C, L), x.dtype),
        grid=(B, nt),
        in_specs=[ac_spec, ac_spec, x_spec],
        out_specs=pl.BlockSpec((1, C, tile), lambda b, l: (b, 0, l)),
        compiler_params=pltpu.CompilerParams(
            dimension_semantics=("parallel", "parallel"),
            vmem_limit_bytes=STREAM_VMEM_LIMIT),
    )(a_bc, c_bc, x)


def reference(x, scale, bias, eps=1e-6):
    """Plain-JAX reference with identical semantics."""
    mean = jnp.mean(x, axis=(1, 2), keepdims=True)
    var = jnp.mean(jnp.square(x - mean), axis=(1, 2), keepdims=True)
    return scale * (x - mean) / jnp.sqrt(var + eps) + bias


if __name__ == "__main__":
    # Small shapes; L=1000 (not a multiple of 128) exercises the in-kernel
    # tail masking in both paths without any host-side padding.
    B, C, L = 2, 4, 1000

    key = jax.random.PRNGKey(0)
    k_x, k_s, k_b = jax.random.split(key, 3)
    x = jax.random.normal(k_x, (B, C, L), dtype=jnp.float32)
    # Module initializes scale=1, bias=0; use non-trivial deterministic values
    # so the affine path is actually checked.
    scale = 1.0 + 0.1 * jax.random.normal(k_s, (1, C, 1), dtype=jnp.float32)
    bias = 0.1 * jax.random.normal(k_b, (1, C, 1), dtype=jnp.float32)

    ref = reference(x, scale, bias)

    # Fused single-pass path (the default for shapes this small).
    out_fused = jax.block_until_ready(
        jax.jit(functools.partial(global_norm, fused=True))(x, scale, bias))
    # Streaming two-pass path, single (tail-masked) L tile.
    out_stream = jax.block_until_ready(
        jax.jit(functools.partial(global_norm, fused=False))(x, scale, bias))
    # Streaming path with multi-tile accumulation (8 L tiles, masked tail).
    out_multi = jax.block_until_ready(
        jax.jit(functools.partial(global_norm, fused=False, tile_lanes=128))(
            x, scale, bias))

    for name, out in (("fused", out_fused), ("stream", out_stream),
                      ("multi", out_multi)):
        assert out.shape == (B, C, L), (name, out.shape)
        assert jnp.allclose(out, ref, atol=1e-4, rtol=1e-4), \
            f"mismatch vs reference: {name}"

    print("KERNEL_OK")
</pallas_src>

<mosaic_0001>
module attributes {stable_mosaic.version = 11 : i64} {
  func.func @_fused_kernel(%arg0: i32, %arg1: memref<1x4x1xf32, #tpu.memory_space<vmem>>, %arg2: memref<1x4x1xf32, #tpu.memory_space<vmem>>, %arg3: memref<1x4x1000xf32, #tpu.memory_space<vmem>>, %arg4: memref<1x4x1000xf32, #tpu.memory_space<vmem>>) attributes {dimension_semantics = [#tpu.dimension_semantics<parallel>], iteration_bounds = array<i64: 2>, scalar_prefetch = 0 : i64, scratch_operands = 0 : i64, tpu.core_type = #tpu.core_type<tc>, window_params = [{pipeline_mode = #tpu.pipeline_mode<synchronous>, transform_indices = @transform_0, window_bounds = array<i64: 1, 4, 1>}, {pipeline_mode = #tpu.pipeline_mode<synchronous>, transform_indices = @transform_1, window_bounds = array<i64: 1, 4, 1>}, {transform_indices = @transform_2, window_bounds = array<i64: 1, 4, 1000>}, {transform_indices = @transform_3, window_bounds = array<i64: 1, 4, 1000>}]} {
    %c0 = arith.constant 0 : index
    %c0_0 = arith.constant 0 : index
    %c0_1 = arith.constant 0 : index
    %0 = vector.load %arg3[%c0, %c0_0, %c0_1] : memref<1x4x1000xf32, #tpu.memory_space<vmem>>, vector<1x4x1000xf32>
    %1 = vector.shape_cast %0 : vector<1x4x1000xf32> to vector<1x1x4x1000xf32>
    %cst = arith.constant dense<0.000000e+00> : vector<1xf32>
    %2 = vector.multi_reduction <add>, %1, %cst [1, 2, 3] : vector<1x1x4x1000xf32> to vector<1xf32>
    %3 = vector.shape_cast %2 : vector<1xf32> to vector<1x1x1x1xf32>
    %4 = vector.extract %3[0, 0, 0, 0] : f32 from vector<1x1x1x1xf32>
    %cst_2 = arith.constant 2.500000e-04 : f32
    %5 = arith.mulf %4, %cst_2 : f32
    %6 = arith.mulf %0, %0 : vector<1x4x1000xf32>
    %7 = vector.shape_cast %6 : vector<1x4x1000xf32> to vector<1x1x4x1000xf32>
    %cst_3 = arith.constant dense<0.000000e+00> : vector<1xf32>
    %8 = vector.multi_reduction <add>, %7, %cst_3 [1, 2, 3] : vector<1x1x4x1000xf32> to vector<1xf32>
    %9 = vector.shape_cast %8 : vector<1xf32> to vector<1x1x1x1xf32>
    %10 = vector.extract %9[0, 0, 0, 0] : f32 from vector<1x1x1x1xf32>
    %cst_4 = arith.constant 2.500000e-04 : f32
    %11 = arith.mulf %10, %cst_4 : f32
    %12 = arith.mulf %5, %5 : f32
    %13 = arith.subf %11, %12 : f32
    %cst_5 = arith.constant 0.000000e+00 : f32
    %14 = arith.maximumf %13, %cst_5 : f32
    %cst_6 = arith.constant 9.99999997E-7 : f32
    %15 = arith.addf %14, %cst_6 : f32
    %16 = math.rsqrt %15 : f32
    %c0_7 = arith.constant 0 : index
    %c0_8 = arith.constant 0 : index
    %c0_9 = arith.constant 0 : index
    %17 = vector.load %arg1[%c0_7, %c0_8, %c0_9] : memref<1x4x1xf32, #tpu.memory_space<vmem>>, vector<1x4x1xf32>
    %18 = vector.broadcast %16 : f32 to vector<1x4x1xf32>
    %19 = arith.mulf %17, %18 : vector<1x4x1xf32>
    %c0_10 = arith.constant 0 : index
    %c0_11 = arith.constant 0 : index
    %c0_12 = arith.constant 0 : index
    %20 = vector.load %arg2[%c0_10, %c0_11, %c0_12] : memref<1x4x1xf32, #tpu.memory_space<vmem>>, vector<1x4x1xf32>
    %21 = vector.broadcast %5 : f32 to vector<1x4x1xf32>
    %22 = arith.mulf %21, %19 : vector<1x4x1xf32>
    %23 = arith.subf %20, %22 : vector<1x4x1xf32>
    %24 = vector.broadcast %19 : vector<1x4x1xf32> to vector<1x4x1000xf32>
    %25 = arith.mulf %0, %24 : vector<1x4x1000xf32>
    %26 = vector.broadcast %23 : vector<1x4x1xf32> to vector<1x4x1000xf32>
    %27 = arith.addf %25, %26 : vector<1x4x1000xf32>
    %c0_13 = arith.constant 0 : index
    %c0_14 = arith.constant 0 : index
    %c0_15 = arith.constant 0 : index
    %28 = vector.load %arg4[%c0_13, %c0_14, %c0_15] : memref<1x4x1000xf32, #tpu.memory_space<vmem>>, vector<1x4x1000xf32>
    tpu.vector_store %arg4[%c0_13, %c0_14, %c0_15], %27 {strides = array<i32>} : memref<1x4x1000xf32, #tpu.memory_space<vmem>>, vector<1x4x1000xf32>,
    return
  }
  func.func @transform_0(%arg0: i32) -> (i32, i32, i32) {
    %c0_i32 = arith.constant 0 : i32
    %c0_i32_0 = arith.constant 0 : i32
    %c0_i32_1 = arith.constant 0 : i32
    %c0_i32_2 = arith.constant 0 : i32
    return %c0_i32, %c0_i32_0, %c0_i32_1 : i32, i32, i32
  }
  func.func @transform_1(%arg0: i32) -> (i32, i32, i32) {
    %c0_i32 = arith.constant 0 : i32
    %c0_i32_0 = arith.constant 0 : i32
    %c0_i32_1 = arith.constant 0 : i32
    %c0_i32_2 = arith.constant 0 : i32
    return %c0_i32, %c0_i32_0, %c0_i32_1 : i32, i32, i32
  }
  func.func @transform_2(%arg0: i32) -> (i32, i32, i32) {
    %c0_i32 = arith.constant 0 : i32
    %c0_i32_0 = arith.constant 0 : i32
    %c0_i32_1 = arith.constant 0 : i32
    return %arg0, %c0_i32, %c0_i32_0 : i32, i32, i32
  }
  func.func @transform_3(%arg0: i32) -> (i32, i32, i32) {
    %c0_i32 = arith.constant 0 : i32
    %c0_i32_0 = arith.constant 0 : i32
    %c0_i32_1 = arith.constant 0 : i32
    return %arg0, %c0_i32, %c0_i32_0 : i32, i32, i32
  }
}

</mosaic_0001>

<bundles_post_ra>
// kernel: global_norm.1
= control target key start
LH: loop header
LB: loop body
LE: loop exit
PB: predicated region body
PF: predicated region fallthrough
CT: control target
= control target key end

     0   :  { %8 = vsyncpa [#allocation3], 0  ;;  %s828_s0 = inlined_call_operand.vmem [shape: f32[1,4,1], index: 0, kind: input, shape index: {}]   ;;  %s829_s1 = inlined_call_operand.vmem [shape: f32[1,4,1], index: 1, kind: input, shape index: {}]   ;;  %s830_s2 = inlined_call_operand.hbm [shape: f32[2,4,1000], index: 2, kind: input, shape index: {}]   ;;  %s831_s3 = inlined_call_operand.hbm [shape: f32[2,4,1000], index: 3, kind: output, shape index: {}]  }
   0x1   :  { %10 = vsyncpa [#allocation3 + $0x1], 0 }
   0x2   :  { %11 = vsyncpa [#allocation4], 0 }
   0x3   :  { %13 = vsyncpa [#allocation4 + $0x1], 0  ;;  %s610_s12 = smov 0   ;;  %s612_s13 = smov 0  }
   0x4   :  { %s614_s14 = smov 0   ;;  %s616_s15 = smov 0  }
   0x5 LB: > { %s631_s16 = sadd.s32 4294967295, %s583_s15   ;;  %s408_s17 = sadd.s32 4294967294, %s583_s15   ;;  %s583_s15 = sphi %s616_s15, %s846_s15   ;;  %s579_s14 = sphi %s614_s14, %s845_s14   ;;  %s575_s13 = sphi %s612_s13, %s844_s13   ;;  %s571_s12 = sphi %s610_s12, %s843_s12  }
   0x6   : > { %s635_s18 = sadd.s32 1, %s583_s15   ;;  %s68_s19 = sadd.s32 1, %s579_s14 }
   0x7   : > { %s65_s20 = ssub.s32 %s583_s15, %s635_s18  ;;  %p75_p0 = scmp.ne.s32.totalorder %s579_s14, %s575_s13 }
   0x8   : > { %p66_p1 = scmp.eq.s32.totalorder %s65_s20, 0  ;;  %p76_p2 = scmp.eq.s32.totalorder %s583_s15, 0 }
   0x9   : > { %p81_p3 = scmp.ne.s32.totalorder %s575_s13, %s571_s12  ;;  %p82_p4 = scmp.eq.s32.totalorder %s631_s16, 0 }
   0xa   : > { %s647_s21 = scalar_select %p66_p1, %s579_s14, %s68_s19  }
   0xb   : > { %p649_p5 = por %p76_p2, %p75_p0  ;;  %p653_p6 = por %p82_p4, %p81_p3 }
   0xc   : > { %p105_p7 = scmp.eq.s32.totalorder %s631_s16, 1  ;;  %p111_p8 = scmp.eq.s32.totalorder %s408_s17, 1 }
   0xd   : > { %p442_p10 = scmp.lt.s32.totalorder %s583_s15, 2  ;;  %s137_s26 = sand.u32 1, %s579_s14  }
   0xe   : > { %p660_p11 = por %p105_p7, %p75_p0  ;;  %p664_p12 = por %p111_p8, %p81_p3 }
   0xf   : > { %s422_s27 = sshll.u32 %s583_s15, 9  ;;  %s411_s28 = sshll.u32 %s137_s26, 5 }
  0x10   : > { %s835_s24 = scalar_select %p660_p11, 1, 0 }
  0x11   : > { %s836_s25 = scalar_select %p664_p12, 1, 0 }
  0x12   : > { %s673_s4 = scalar_lea.hbm %s830_s2, %s422_s27  ;;  %s141_s5 = scalar_lea.vmem [#allocation2], %s411_s28 }
  0x13   : > { %s149_s6 = sshll.u32 %s141_s5, 4  ;;  %p677_p13 = pnand %p442_p10, %p649_p5  ;;  %s681_s6 = int_to_ptr.vmem [resolvable:$true] %s149_s6 }
  0x14   : > { %s138_s8 = scalar_lea.sflag [#allocation3], %s137_s26  ;;  %s487_s9 = scalar_lea.hbm %s673_s4, 512 }
  0x15   : > { %p488_p2 = scmp.ne.s32.totalorder %s673_s4, %s487_s9  ;;  %p489_p3 = pneg %p677_p13 }
  0x16   : > { %s492_s17 = scalar_lea.hbm %s830_s2, 1024  ;;  %p493_p5 = scmp.lt.u32.totalorder %s673_s4, %s830_s2 }
  0x17   : > { %p490_p4 = pnand %p489_p3, %p488_p2  ;;  %p494_p8 = scmp.lt.u32.totalorder %s492_s17, %s487_s9 }
  0x18   : > { %p496_p9 = scmp.lt.u32.totalorder %s487_s9, %s673_s4 }
  0x19   : > { %p491_p7 = pneg %p490_p4  ;;  %p495_p10 = por %p494_p8, %p493_p5 }
  0x1b   : > { %p497_p0 = por %p496_p9, %p495_p10 }
  0x1d   : > { %p498_p1 = pnand %p497_p0, %p491_p7 }
  0x1f   : > { %501 = shalt.err (!%p498_p1)
}
  0x20   : > { %s502_s22 = scalar_lea.vmem %s681_s6, 512  ;;  %s585_s26 = smov [#allocation2]  }
  0x21   : > { %p503_p2 = scmp.ne.s32.totalorder %s681_s6, %s502_s22  ;;  %s507_s27 = sshll.u32 %s585_s26, 4  ;;  %s508_s27 = int_to_ptr.vmem [resolvable:$false] %s507_s27 }
  0x22   : > { %s509_s28 = scalar_lea.vmem %s508_s27, 1024  ;;  %p510_p11 = scmp.lt.s32.totalorder %s681_s6, %s508_s27 }
  0x23   : > { %p505_p4 = pnand %p503_p2, %p489_p3  ;;  %p511_p5 = scmp.lt.s32.totalorder %s509_s28, %s502_s22 }
  0x25   : > { %p506_p12 = pneg %p505_p4  ;;  %p512_p8 = por %p511_p5, %p510_p11 }
  0x27   : > { %p513_p9 = pnand %p512_p8, %p506_p12 }
  0x29   : > { %516 = shalt.err (!%p513_p9)
}
  0x2a   : > { %437 = dma.hbm_to_vmem [thread:$0]  (!%p677_p13), %s673_s4, 512, %s681_s6, %s138_s8  }
  0x2b   : > { %p838_p0 = scmp.lt.s32.totalorder %s583_s15, 3  ;;  %p839_p1 = scmp.ge.s32.totalorder %s583_s15, 1 }
  0x2d   : > { %p155_p3 = pnand %p839_p1, %p838_p0 }
  0x2e   : > { %s715_s29 = sand.u32 (!%p155_p3), 1, %s575_s13  }
  0x2f   : > { %158 = sbr.rel (%p155_p3) target bundleno = 504 (0x1f8), region = 32  ;;  %s415_s30 = sshll.u32 (!%p155_p3), %s715_s29, 5 }
  0x30   : > { %s161_s5 = scalar_lea.sflag (!%p155_p3), [#allocation3], %s715_s29  ;;  %s164_s7 = scalar_lea.vmem (!%p155_p3), [#allocation2], %s415_s30 }
  0x36   : > { %562 = dma.done.wait (%p653_p6), %s161_s5, 512  }
  0x37   : > { %564 = vsyncadd (%p653_p6), %s161_s5, 4294966784  ;;  %vm203_vm0 = vcmask 1043456   ;;  %v725_v0 = vld [vmem:[%s164_s7] sm:$0xff]  ;;  %v727_v1 = vld [vmem:[%s164_s7 + $0x8] sm:$0xff]  ;;  %vm217_vm1 = vcmask 846848   ;;  %v586_v56 = vmov 0  }
  0x38   : > { %v729_v2 = vld [vmem:[%s164_s7 + $0x10] sm:$0xff]  ;;  %v195_v3 = vcombine.high %v725_v0, %v725_v0  ;;  %v196_v4 = vcombine.high %v727_v1, %v727_v1  ;;  %v204_v5 = vsel %vm203_vm0, %v725_v0, 0.0  ;;  %v207_v7 = vsel %vm203_vm0, %v727_v1, 0.0  ;;  %v746_v12 = vld [vmem:[%s164_s7 + $0x18] sm:$0xff]  ;;  %479 = vset.pattern.permute.xlu1 %v586_v56  ;;  %480 = vset.pattern.permute.xlu0 %v586_v56  ;;  %s587_s11 = smov 0.0   ;;  %s423_s5 = sshll.u32 %s631_s16, 9 }
  0x39   : > { %v230_v8 = vmul.f32 %v725_v0, %v725_v0  ;;  %v197_v9 = vcombine.high %v729_v2, %v729_v2  ;;  %v231_v11 = vmul.f32 %v727_v1, %v727_v1  ;;  %v232_v14 = vmul.f32 %v729_v2, %v729_v2  ;;  %v278_v63 = vld [vmem:[%s828_s0] sm:$0xf]  ;;  %s186_s7 = scalar_lea.vmem [#allocation5], %s415_s30  ;;  %s784_s30 = scalar_lea.hbm %s831_s3, %s423_s5 }
  0x3a   : > { %v205_v6 = vsel %vm203_vm0, %v195_v3, 0.0  ;;  %v209_v13 = vsel %vm203_vm0, %v196_v4, 0.0  ;;  %v211_v19 = vsel %vm203_vm0, %v729_v2, 0.0  ;;  %v198_v22 = vcombine.high %v746_v12, %v746_v12  ;;  %p840_p11 = scmp.ne.s32.totalorder %s835_s24, 0 }
  0x3b   : > { %v206_v10 = vadd.f32 %v205_v6, %v204_v5  ;;  %v238_v15 = vcombine.high %v230_v8, %v230_v8  ;;  %v246_v16 = vsel %vm203_vm0, %v230_v8, 0.0  ;;  %v239_v18 = vcombine.high %v231_v11, %v231_v11  ;;  %v281_v6 = vld [vmem:[%s829_s1] sm:$0xf] }
  0x3c   : > { %v249_v21 = vsel %vm203_vm0, %v231_v11, 0.0  ;;  %v213_v25 = vsel %vm203_vm0, %v197_v9, 0.0  ;;  %v233_v26 = vmul.f32 %v746_v12, %v746_v12  ;;  %v240_v27 = vcombine.high %v232_v14, %v232_v14 }
  0x3d   : > { %v208_v17 = vadd.f32 %v207_v7, %v206_v10  ;;  %v247_v20 = vsel %vm203_vm0, %v238_v15, 0.0  ;;  %v251_v28 = vsel %vm203_vm0, %v239_v18, 0.0  ;;  %v215_v31 = vsel %vm203_vm0, %v746_v12, 0.0 }
  0x3e   : > { %v248_v24 = vadd.f32 %v247_v20, %v246_v16  ;;  %v253_v32 = vsel %vm203_vm0, %v232_v14, 0.0  ;;  %v218_v35 = vsel %vm217_vm1, %v198_v22, 0.0  ;;  %v241_v36 = vcombine.high %v233_v26, %v233_v26 }
  0x3f   : > { %v210_v23 = vadd.f32 %v209_v13, %v208_v17  ;;  %v255_v37 = vsel %vm203_vm0, %v240_v27, 0.0  ;;  %v257_v40 = vsel %vm203_vm0, %v233_v26, 0.0  ;;  %v588_v9 = vmov 839922192  }
  0x40   : > { %v250_v30 = vadd.f32 %v249_v21, %v248_v24  ;;  %v259_v43 = vsel %vm217_vm1, %v241_v36, 0.0  ;;  %v290_v10 = vunpack.c.l.s4 %v588_v9  ;;  %v292_v11 = vlaneseq }
  0x41   : > { %v212_v29 = vadd.f32 %v211_v19, %v210_v23  ;;  %vm320_vm2 = vcmask 850948  }
  0x42   : > { %v252_v34 = vadd.f32 %v251_v28, %v250_v30  ;;  %v291_v13 = vunpack.c.0.s8 %v290_v10  ;;  %v293_v14 = vshrl.u32 %v292_v11, 7  ;;  %vm321_vm3 = vmor %vm320_vm2, %vm203_vm0 }
  0x43   : > { %v214_v33 = vadd.f32 %v213_v25, %v212_v29 }
  0x44   : > { %v254_v39 = vadd.f32 %v253_v32, %v252_v34  ;;  %v294_v15 = vsub.s32 %v291_v13, %v293_v14 }
  0x45   : > { %v216_v38 = vadd.f32 %v215_v31, %v214_v33 }
  0x46   : > { %v256_v42 = vadd.f32 %v255_v37, %v254_v39 }
  0x47   : > { %v219_v41 = vadd.f32 %v218_v35, %v216_v38 }
  0x48   : > { %v258_v44 = vadd.f32 %v257_v40, %v256_v42 }
  0x49   : > { %220 = vadd.xlane.f32.xlu0 %v219_v41 }
  0x4a   : > { %v260_v45 = vadd.f32 %v259_v43, %v258_v44 }
  0x4d   : > { %261 = vadd.xlane.f32.xlu0 %v260_v45 }
  0xd6   : > { %v221_v46 = vpop.xlane.xlu0 %220 }
  0xd7   : > { %v222_v47 = vrot.slane %v221_v46, 4 }
  0xd9   : > { %v223_v48 = vadd.f32 %v222_v47, %v221_v46 }
  0xda   : > { %v262_v49 = vpop.xlane.xlu0 %261 }
  0xdb   : > { %v224_v50 = vrot.slane %v223_v48, 2  ;;  %v263_v51 = vrot.slane %v262_v49, 4 }
  0xdd   : > { %v264_v52 = vadd.f32 %v263_v51, %v262_v49  ;;  %v225_v53 = vadd.f32 %v224_v50, %v223_v48 }
  0xdf   : > { %v265_v54 = vrot.slane %v264_v52, 2  ;;  %v226_v55 = vrot.slane %v225_v53, 1 }
  0xe1   : > { %v266_v57 = vadd.f32 %v265_v54, %v264_v52  ;;  %v227_v58 = vadd.f32 %v226_v55, %v225_v53 }
  0xe3   : > { %424 = vpush %v227_v58  ;;  %v267_v59 = vrot.slane %v266_v57, 1 }
  0xe5   : > { %v268_v60 = vadd.f32 %v267_v59, %v266_v57 }
  0xe7   : > { %426 = vpush %v268_v60 }
 0x114   : > { %s425_s23 = spop %424 }
 0x115   : > { %s229_s4 = smul.f32 0.00025, %s425_s23  ;;  %s338_s23 = sshll.u32 %s186_s7, 4  ;;  %s786_s23 = int_to_ptr.vmem [resolvable:$true] %s338_s23 }
 0x117   : > { %s271_s6 = smul.f32 %s229_s4, %s229_s4  ;;  %v282_v5 = vstv %s229_s4 }
 0x118   : > { %s427_s8 = spop %426 }
 0x119   : > { %s270_s9 = smul.f32 0.00025, %s427_s8  ;;  %s517_s8 = scalar_lea.vmem %s786_s23, 512 }
 0x11a   : > { %p518_p6 = scmp.ne.s32.totalorder %s786_s23, %s517_s8 }
 0x11b   : > { %s272_s10 = ssub.f32 %s270_s9, %s271_s6  ;;  %s324_s6 = scalar_lea.sflag [#allocation4], %s715_s29 }
 0x11c   : > { %p519_p12 = pnand %p518_p6, %p840_p11  ;;  %s589_s9 = smov [#allocation5]  }
 0x11d   : > { %s273_s17 = smax.f32 %s587_s11, %s272_s10  ;;  %s521_s10 = sshll.u32 %s589_s9, 4  ;;  %s522_s10 = int_to_ptr.vmem [resolvable:$false] %s521_s10 }
 0x11e   : > { %s274_s19 = sadd.f32 1e-06, %s273_s17  ;;  %p520_p13 = pneg %p519_p12 }
 0x11f   : > { %s523_s11 = scalar_lea.vmem %s522_s10, 1024  ;;  %p524_p7 = scmp.lt.s32.totalorder %s786_s23, %s522_s10 }
 0x120   : > { %v275_v61 = vstv %s274_s19  ;;  %p525_p10 = scmp.lt.s32.totalorder %s523_s11, %s517_s8 }
 0x121   : > { %485 = vrsqrt.f32 %v275_v61 }
 0x122   : > { %p526_p2 = por %p525_p10, %p524_p7 }
 0x124   : > { %p527_p4 = pnand %p526_p2, %p520_p13 }
 0x12b   : > { %v486_v62 = vpop.eup %485 }
 0x12c   : > { %428 = vpush %v486_v62 }
 0x15d   : > { %s429_s26 = spop %428 }
 0x15e   : > { %v279_v3 = vstv %s429_s26 }
 0x15f   : > { %v280_v4 = vmul.f32 %v279_v3, %v278_v63 }
 0x161   : > { %v283_v7 = vmul.f32 %v282_v5, %v280_v4  ;;  %287 = vperm.xlu1 %479, %v280_v4  }
 0x163   : > { %v284_v8 = vsub.f32 %v281_v6, %v283_v7 }
 0x165   : > { %303 = vperm.xlu1 %479, %v284_v8  }
 0x1e0   : > { %v288_v16 = vpop.permute.xlu1 %287 }
 0x1e1   : > { %v295_v17 = vrot.slane %v288_v16, %v294_v15 }
 0x1e3   : > { %v297_v18 = vmul.f32 %v295_v17, %v725_v0  ;;  %v298_v20 = vmul.f32 %v295_v17, %v727_v1  ;;  %v299_v21 = vmul.f32 %v295_v17, %v729_v2  ;;  %v300_v22 = vmul.f32 %v295_v17, %v746_v12 }
 0x1e4   : > { %v304_v19 = vpop.permute.xlu1 %303 }
 0x1e5   : > { %v311_v23 = vrot.slane %v304_v19, %v294_v15 }
 0x1e7   : > { %v313_v24 = vadd.f32 %v311_v23, %v297_v18  ;;  %v314_v25 = vadd.f32 %v311_v23, %v298_v20  ;;  %v315_v26 = vadd.f32 %v311_v23, %v299_v21  ;;  %v316_v0 = vadd.f32 %v311_v23, %v300_v22 }
 0x1e9   : > { %317 = vst [vmem:[%s186_s7] sm:$0xff] %v313_v24  ;;  %318 = vst [vmem:[%s186_s7 + $0x8] sm:$0xff] %v314_v25 }
 0x1ea   : > { %319 = vst [vmem:[%s186_s7 + $0x10] sm:$0xff] %v315_v26  ;;  %322 = vst.msk [vmem:[%s186_s7 + $0x18] sm:$0xff] %vm321_vm3, %v316_v0 }
 0x1eb   : > { %530 = shalt.err (!%p527_p4)
}
 0x1ec   : > { %s531_s29 = scalar_lea.hbm %s784_s30, 512  ;;  %s535_s20 = scalar_lea.hbm %s831_s3, 1024 }
 0x1ed   : > { %p532_p5 = scmp.ne.s32.totalorder %s784_s30, %s531_s29  ;;  %p536_p0 = scmp.lt.u32.totalorder %s784_s30, %s831_s3 }
 0x1ee   : > { %p537_p1 = scmp.lt.u32.totalorder %s535_s20, %s531_s29  ;;  %p539_p6 = scmp.lt.u32.totalorder %s531_s29, %s784_s30 }
 0x1ef   : > { %p533_p8 = pnand %p532_p5, %p840_p11 }
 0x1f0   : > { %p538_p3 = por %p537_p1, %p536_p0 }
 0x1f1   : > { %p534_p9 = pneg %p533_p8 }
 0x1f2   : > { %p540_p12 = por %p539_p6, %p538_p3 }
 0x1f4   : > { %p541_p13 = pnand %p540_p12, %p534_p9 }
 0x1f6   : > { %544 = shalt.err (!%p541_p13)
}
 0x1f7   : > { %432 = dma.vmem_to_hbm [thread:$0]  (%p840_p11), %s786_s23, 512, %s784_s30, %s324_s6  }
 0x1f8 PF: > { %s350_s27 = sand.u32 1, %s571_s12   ;;  %p841_p7 = scmp.ne.s32.totalorder %s836_s25, 0 }
 0x1f9   : > { %p842_p10 = scmp.ge.s32.totalorder %s583_s15, 2  ;;  %s351_s28 = scalar_lea.sflag [#allocation4], %s350_s27 }
 0x1fb   : > { %p439_p2 = pnand %p842_p10, %p841_p7 }
 0x1fd   : > { %566 = dma.done.wait (!%p439_p2), %s351_s28, 512  }
 0x1fe   : > { %568 = vsyncadd (!%p439_p2), %s351_s28, 4294966784  ;;  %p16_p4 = scmp.ge.s32.totalorder %s635_s18, 4   ;;  %s843_s12 = smov %s575_s13 }
 0x1ff   : > { %s844_s13 = smov %s579_s14  ;;  %s845_s14 = smov %s647_s21 }
 0x200   : > { %s846_s15 = smov %s635_s18  ;;  %18 = sbr.rel (!%p16_p4) target bundleno = 5 (0x5), region = 77 }
 0x207   :  { %356 = vsyncpa [#allocation3], 1 }
 0x208   :  { %358 = vsyncpa [#allocation3 + $0x1], 1 }
 0x209   :  { %359 = vsyncpa [#allocation4], 1 }
 0x20a   :  { %361 = vsyncpa [#allocation4 + $0x1], 1 }

</bundles_post_ra>
